<compile_context>
chip_gen: v6e
topology: v6e:2x2x1
jax: 0.10.0
libtpu: 0.0.40
codegen_flags: <defaults>
</compile_context>

<pallas_src>
import functools

import jax
import jax.numpy as jnp
from jax.experimental import pallas as pl
from jax.experimental.pallas import tpu as pltpu

EPS = 1e-5                  # PyTorch nn.LayerNorm default
MAX_TILE_B = 2048           # max rows per grid step
MIN_TILE_B = 256            # don't split into 2 blocks below 2x this
HIDDEN = (256, 128, 64)
N_OUT = 2
N_OUT_PADDED = 128          # fc_out weight padded to 128 cols for clean MXU lowering


def _round_up(n, m):
    return ((n + m - 1) // m) * m


def _param_layout(input_dim):
    """Lane-aligned (multiples of 128) offsets of every small (1, d) parameter
    inside the single packed parameter vector."""
    dims = [("ln0_g", input_dim), ("ln0_b", input_dim),
            ("b1", HIDDEN[0]), ("g1", HIDDEN[0]), ("be1", HIDDEN[0]),
            ("b2", HIDDEN[1]), ("g2", HIDDEN[1]), ("be2", HIDDEN[1]),
            ("b3", HIDDEN[2]), ("g3", HIDDEN[2]), ("be3", HIDDEN[2]),
            ("b4", N_OUT_PADDED)]
    layout, off = {}, 0
    for name, d in dims:
        layout[name] = (off, d)
        off += _round_up(d, 128)
    return layout, off


def _layernorm_bf16(x, gamma, beta):
    """Two-pass LayerNorm (stable), gamma folded into the rsqrt scale, result
    emitted directly as bf16 for the following MXU matmul."""
    mu = jnp.mean(x, axis=-1, keepdims=True)
    xc = x - mu
    var = jnp.mean(xc * xc, axis=-1, keepdims=True)
    scale = gamma * jax.lax.rsqrt(var + EPS)
    return (xc * scale + beta).astype(jnp.bfloat16)


def _dense_relu_ln(x_bf16, w, b, gamma, beta):
    """fc -> relu -> LayerNorm (dropout is identity in eval mode)."""
    y = jnp.dot(x_bf16, w, preferred_element_type=jnp.float32) + b
    y = jnp.maximum(y, 0.0)
    return _layernorm_bf16(y, gamma, beta)


def improved_adult_net_kernel(layout, x_ref, w1_ref, w2_ref, w3_ref, w4_ref,
                              p_ref, o_ref):
    def p(name):
        off, d = layout[name]
        return p_ref[:, off:off + d]          # static, 128-aligned slice

    h = _layernorm_bf16(x_ref[...], p("ln0_g"), p("ln0_b"))
    h = _dense_relu_ln(h, w1_ref[...], p("b1"), p("g1"), p("be1"))
    h = _dense_relu_ln(h, w2_ref[...], p("b2"), p("g2"), p("be2"))
    h = _dense_relu_ln(h, w3_ref[...], p("b3"), p("g3"), p("be3"))

    # fc_out: padded-to-128 weight keeps the MXU lowering clean; only the two
    # real logit columns are written back.
    logits = jnp.dot(h, w4_ref[...], preferred_element_type=jnp.float32)
    o_ref[...] = logits[:, :N_OUT] + p("b4")[:, :N_OUT]


def init_params(key, input_dim):
    """Kaiming-normal (fan_in, relu gain) weights stored bf16 as (in, out);
    biases zero; LN gamma=1, beta=0.  fc_out weight zero-padded to 128 cols.
    All (1, d) vectors live in one packed, lane-aligned f32 array."""
    layout, total = _param_layout(input_dim)
    dims = [(input_dim, HIDDEN[0]), (HIDDEN[0], HIDDEN[1]),
            (HIDDEN[1], HIDDEN[2]), (HIDDEN[2], N_OUT)]
    params = {}
    keys = jax.random.split(key, len(dims))
    for i, ((fan_in, fan_out), k) in enumerate(zip(dims, keys), start=1):
        std = (2.0 / fan_in) ** 0.5
        w = jax.random.normal(k, (fan_in, fan_out), jnp.float32) * std
        if i == 4:
            w = jnp.pad(w, ((0, 0), (0, N_OUT_PADDED - N_OUT)))
        params[f"w{i}"] = w.astype(jnp.bfloat16)    # MXU operands in bf16
    packed = jnp.zeros((1, total), jnp.float32)
    for name in ("ln0_g", "g1", "g2", "g3"):        # LN gammas = 1
        off, d = layout[name]
        packed = packed.at[:, off:off + d].set(1.0)
    params["packed"] = packed
    return params


@jax.jit
def improved_adult_net(x, params):
    batch, input_dim = x.shape
    layout, total = _param_layout(input_dim)

    # Grid / tile selection: pad only to a multiple of 8, derive tile_b from
    # the block count so waste stays <8 rows per block.  Force >=2 blocks for
    # medium/large batches so v7x megacore has work for both TensorCores.
    padded8 = _round_up(batch, 8)
    n_blocks = pl.cdiv(padded8, MAX_TILE_B)
    if n_blocks == 1 and padded8 >= 2 * MIN_TILE_B:
        n_blocks = 2
    tile_b = _round_up(pl.cdiv(padded8, n_blocks), 8)
    padded_batch = n_blocks * tile_b
    if padded_batch != batch:
        x = jnp.pad(x, ((0, padded_batch - batch), (0, 0)))

    args = (x, params["w1"], params["w2"], params["w3"], params["w4"],
            params["packed"])

    # x / out are pipelined over the batch grid axis; weights and the packed
    # parameter vector use constant index_maps so they stay VMEM-resident.
    def const_spec(a):
        return pl.BlockSpec(a.shape, lambda i: (0,) * a.ndim)

    in_specs = [pl.BlockSpec((tile_b, input_dim), lambda i: (i, 0))]
    in_specs += [const_spec(a) for a in args[1:]]
    out_spec = pl.BlockSpec((tile_b, N_OUT), lambda i: (i, 0))

    param_bytes = sum(int(a.size) * a.dtype.itemsize for a in args[1:])
    cost = pl.CostEstimate(
        flops=2 * padded_batch * (input_dim * HIDDEN[0]
                                  + HIDDEN[0] * HIDDEN[1]
                                  + HIDDEN[1] * HIDDEN[2]
                                  + HIDDEN[2] * N_OUT_PADDED),
        transcendentals=4 * padded_batch,   # one rsqrt per row per LayerNorm
        bytes_accessed=padded_batch * (input_dim + N_OUT) * 4 + param_bytes,
    )

    out = pl.pallas_call(
        functools.partial(improved_adult_net_kernel, layout),
        out_shape=jax.ShapeDtypeStruct((padded_batch, N_OUT), jnp.float32),
        grid_spec=pltpu.PrefetchScalarGridSpec(
            num_scalar_prefetch=0,
            grid=(n_blocks,),
            in_specs=in_specs,
            out_specs=out_spec,
        ),
        compiler_params=pltpu.CompilerParams(
            dimension_semantics=("parallel",),     # megacore sharding on v7x
            vmem_limit_bytes=32 * 1024 * 1024,     # covers v5e's 16 MB default
        ),
        cost_estimate=cost,
    )(*args)

    return out[:batch] if padded_batch != batch else out


def _reference(x, params):
    """Pure-JAX reference using the exact same math helpers (bf16 MXU operands,
    f32 accumulation, two-pass LayerNorm)."""
    layout, _ = _param_layout(x.shape[1])
    packed = params["packed"]

    def g(name):
        off, d = layout[name]
        return packed[:, off:off + d]

    h = _layernorm_bf16(x, g("ln0_g"), g("ln0_b"))
    h = _dense_relu_ln(h, params["w1"], g("b1"), g("g1"), g("be1"))
    h = _dense_relu_ln(h, params["w2"], g("b2"), g("g2"), g("be2"))
    h = _dense_relu_ln(h, params["w3"], g("b3"), g("g3"), g("be3"))
    logits = jnp.dot(h, params["w4"], preferred_element_type=jnp.float32)
    return logits[:, :N_OUT] + g("b4")[:, :N_OUT]


if __name__ == "__main__":
    INPUT_DIM = 32
    BATCH = 32

    key = jax.random.PRNGKey(0)
    k_x, k_p = jax.random.split(key)
    x = jax.random.normal(k_x, (BATCH, INPUT_DIM), jnp.float32)
    params = init_params(k_p, INPUT_DIM)

    out = jax.block_until_ready(improved_adult_net(x, params))

    ref = _reference(x, params)
    assert out.shape == (BATCH, N_OUT)
    # bf16 MXU operands => slightly looser tolerance than a pure-f32 check.
    assert jnp.allclose(out, ref, atol=2e-3, rtol=2e-3), "mismatch vs reference"

    print("KERNEL_OK")
</pallas_src>

<mosaic_0001>
module attributes {stable_mosaic.version = 11 : i64} {
  func.func @improved_adult_net_kernel(%arg0: i32, %arg1: memref<32x32xf32, #tpu.memory_space<vmem>>, %arg2: memref<32x256xbf16, #tpu.memory_space<vmem>>, %arg3: memref<256x128xbf16, #tpu.memory_space<vmem>>, %arg4: memref<128x64xbf16, #tpu.memory_space<vmem>>, %arg5: memref<64x128xbf16, #tpu.memory_space<vmem>>, %arg6: memref<1x1920xf32, #tpu.memory_space<vmem>>, %arg7: memref<32x2xf32, #tpu.memory_space<vmem>>) attributes {dimension_semantics = [#tpu.dimension_semantics<parallel>], iteration_bounds = array<i64: 1>, scalar_prefetch = 0 : i64, scratch_operands = 0 : i64, tpu.core_type = #tpu.core_type<tc>, window_params = [{transform_indices = @transform_0, window_bounds = array<i64: 32, 32>}, {pipeline_mode = #tpu.pipeline_mode<synchronous>, transform_indices = @transform_1, window_bounds = array<i64: 32, 256>}, {pipeline_mode = #tpu.pipeline_mode<synchronous>, transform_indices = @transform_2, window_bounds = array<i64: 256, 128>}, {pipeline_mode = #tpu.pipeline_mode<synchronous>, transform_indices = @transform_3, window_bounds = array<i64: 128, 64>}, {pipeline_mode = #tpu.pipeline_mode<synchronous>, transform_indices = @transform_4, window_bounds = array<i64: 64, 128>}, {pipeline_mode = #tpu.pipeline_mode<synchronous>, transform_indices = @transform_5, window_bounds = array<i64: 1, 1920>}, {transform_indices = @transform_6, window_bounds = array<i64: 32, 2>}]} {
    %c0 = arith.constant 0 : index
    %c0_0 = arith.constant 0 : index
    %0 = vector.load %arg1[%c0, %c0_0] : memref<32x32xf32, #tpu.memory_space<vmem>>, vector<32x32xf32>
    %c0_1 = arith.constant 0 : index
    %c0_2 = arith.constant 0 : index
    %1 = vector.load %arg6[%c0_1, %c0_2] : memref<1x1920xf32, #tpu.memory_space<vmem>>, vector<1x32xf32>
    %c0_3 = arith.constant 0 : index
    %c128 = arith.constant 128 : index
    %2 = vector.load %arg6[%c0_3, %c128] : memref<1x1920xf32, #tpu.memory_space<vmem>>, vector<1x32xf32>
    %cst = arith.constant dense<0.000000e+00> : vector<32xf32>
    %3 = vector.multi_reduction <add>, %0, %cst [1] : vector<32x32xf32> to vector<32xf32>
    %4 = vector.shape_cast %3 : vector<32xf32> to vector<32x1xf32>
    %cst_4 = arith.constant 3.200000e+01 : f32
    %5 = vector.broadcast %cst_4 : f32 to vector<32x1xf32>
    %6 = arith.divf %4, %5 : vector<32x1xf32>
    %7 = vector.broadcast %6 : vector<32x1xf32> to vector<32x32xf32>
    %8 = arith.subf %0, %7 : vector<32x32xf32>
    %9 = arith.mulf %8, %8 : vector<32x32xf32>
    %cst_5 = arith.constant dense<0.000000e+00> : vector<32xf32>
    %10 = vector.multi_reduction <add>, %9, %cst_5 [1] : vector<32x32xf32> to vector<32xf32>
    %11 = vector.shape_cast %10 : vector<32xf32> to vector<32x1xf32>
    %cst_6 = arith.constant 3.200000e+01 : f32
    %12 = vector.broadcast %cst_6 : f32 to vector<32x1xf32>
    %13 = arith.divf %11, %12 : vector<32x1xf32>
    %cst_7 = arith.constant 9.99999974E-6 : f32
    %14 = vector.broadcast %cst_7 : f32 to vector<32x1xf32>
    %15 = arith.addf %13, %14 : vector<32x1xf32>
    %16 = math.rsqrt %15 : vector<32x1xf32>
    %17 = vector.broadcast %1 : vector<1x32xf32> to vector<32x32xf32>
    %18 = vector.broadcast %16 : vector<32x1xf32> to vector<32x32xf32>
    %19 = arith.mulf %17, %18 : vector<32x32xf32>
    %20 = arith.mulf %8, %19 : vector<32x32xf32>
    %21 = vector.broadcast %2 : vector<1x32xf32> to vector<32x32xf32>
    %22 = arith.addf %20, %21 : vector<32x32xf32>
    %23 = arith.truncf %22 : vector<32x32xf32> to vector<32x32xbf16>
    %c0_8 = arith.constant 0 : index
    %c0_9 = arith.constant 0 : index
    %24 = vector.load %arg2[%c0_8, %c0_9] : memref<32x256xbf16, #tpu.memory_space<vmem>>, vector<32x256xbf16>
    %c0_10 = arith.constant 0 : index
    %c256 = arith.constant 256 : index
    %25 = vector.load %arg6[%c0_10, %c256] : memref<1x1920xf32, #tpu.memory_space<vmem>>, vector<1x256xf32>
    %c0_11 = arith.constant 0 : index
    %c512 = arith.constant 512 : index
    %26 = vector.load %arg6[%c0_11, %c512] : memref<1x1920xf32, #tpu.memory_space<vmem>>, vector<1x256xf32>
    %c0_12 = arith.constant 0 : index
    %c768 = arith.constant 768 : index
    %27 = vector.load %arg6[%c0_12, %c768] : memref<1x1920xf32, #tpu.memory_space<vmem>>, vector<1x256xf32>
    %cst_13 = arith.constant dense<0.000000e+00> : vector<32x256xf32>
    %28 = tpu.matmul %23, %24, %cst_13 {dimension_numbers = #tpu.dot_dimension_numbers<[1], [0], [0], [1], [0, 0, 1, 1], [], []>} : vector<32x32xbf16>, vector<32x256xbf16>, vector<32x256xf32> -> vector<32x256xf32>
    %29 = vector.broadcast %25 : vector<1x256xf32> to vector<32x256xf32>
    %30 = arith.addf %28, %29 : vector<32x256xf32>
    %cst_14 = arith.constant 0.000000e+00 : f32
    %31 = vector.broadcast %cst_14 : f32 to vector<32x256xf32>
    %32 = arith.maximumf %30, %31 : vector<32x256xf32>
    %cst_15 = arith.constant dense<0.000000e+00> : vector<32xf32>
    %33 = vector.multi_reduction <add>, %32, %cst_15 [1] : vector<32x256xf32> to vector<32xf32>
    %34 = vector.shape_cast %33 : vector<32xf32> to vector<32x1xf32>
    %cst_16 = arith.constant 2.560000e+02 : f32
    %35 = vector.broadcast %cst_16 : f32 to vector<32x1xf32>
    %36 = arith.divf %34, %35 : vector<32x1xf32>
    %37 = vector.broadcast %36 : vector<32x1xf32> to vector<32x256xf32>
    %38 = arith.subf %32, %37 : vector<32x256xf32>
    %39 = arith.mulf %38, %38 : vector<32x256xf32>
    %cst_17 = arith.constant dense<0.000000e+00> : vector<32xf32>
    %40 = vector.multi_reduction <add>, %39, %cst_17 [1] : vector<32x256xf32> to vector<32xf32>
    %41 = vector.shape_cast %40 : vector<32xf32> to vector<32x1xf32>
    %cst_18 = arith.constant 2.560000e+02 : f32
    %42 = vector.broadcast %cst_18 : f32 to vector<32x1xf32>
    %43 = arith.divf %41, %42 : vector<32x1xf32>
    %cst_19 = arith.constant 9.99999974E-6 : f32
    %44 = vector.broadcast %cst_19 : f32 to vector<32x1xf32>
    %45 = arith.addf %43, %44 : vector<32x1xf32>
    %46 = math.rsqrt %45 : vector<32x1xf32>
    %47 = vector.broadcast %26 : vector<1x256xf32> to vector<32x256xf32>
    %48 = vector.broadcast %46 : vector<32x1xf32> to vector<32x256xf32>
    %49 = arith.mulf %47, %48 : vector<32x256xf32>
    %50 = arith.mulf %38, %49 : vector<32x256xf32>
    %51 = vector.broadcast %27 : vector<1x256xf32> to vector<32x256xf32>
    %52 = arith.addf %50, %51 : vector<32x256xf32>
    %53 = arith.truncf %52 : vector<32x256xf32> to vector<32x256xbf16>
    %c0_20 = arith.constant 0 : index
    %c0_21 = arith.constant 0 : index
    %54 = vector.load %arg3[%c0_20, %c0_21] : memref<256x128xbf16, #tpu.memory_space<vmem>>, vector<256x128xbf16>
    %c0_22 = arith.constant 0 : index
    %c1024 = arith.constant 1024 : index
    %55 = vector.load %arg6[%c0_22, %c1024] : memref<1x1920xf32, #tpu.memory_space<vmem>>, vector<1x128xf32>
    %c0_23 = arith.constant 0 : index
    %c1152 = arith.constant 1152 : index
    %56 = vector.load %arg6[%c0_23, %c1152] : memref<1x1920xf32, #tpu.memory_space<vmem>>, vector<1x128xf32>
    %c0_24 = arith.constant 0 : index
    %c1280 = arith.constant 1280 : index
    %57 = vector.load %arg6[%c0_24, %c1280] : memref<1x1920xf32, #tpu.memory_space<vmem>>, vector<1x128xf32>
    %cst_25 = arith.constant dense<0.000000e+00> : vector<32x128xf32>
    %58 = tpu.matmul %53, %54, %cst_25 {dimension_numbers = #tpu.dot_dimension_numbers<[1], [0], [0], [1], [0, 0, 1, 1], [], []>} : vector<32x256xbf16>, vector<256x128xbf16>, vector<32x128xf32> -> vector<32x128xf32>
    %59 = vector.broadcast %55 : vector<1x128xf32> to vector<32x128xf32>
    %60 = arith.addf %58, %59 : vector<32x128xf32>
    %cst_26 = arith.constant 0.000000e+00 : f32
    %61 = vector.broadcast %cst_26 : f32 to vector<32x128xf32>
    %62 = arith.maximumf %60, %61 : vector<32x128xf32>
    %cst_27 = arith.constant dense<0.000000e+00> : vector<32xf32>
    %63 = vector.multi_reduction <add>, %62, %cst_27 [1] : vector<32x128xf32> to vector<32xf32>
    %64 = vector.shape_cast %63 : vector<32xf32> to vector<32x1xf32>
    %cst_28 = arith.constant 1.280000e+02 : f32
    %65 = vector.broadcast %cst_28 : f32 to vector<32x1xf32>
    %66 = arith.divf %64, %65 : vector<32x1xf32>
    %67 = vector.broadcast %66 : vector<32x1xf32> to vector<32x128xf32>
    %68 = arith.subf %62, %67 : vector<32x128xf32>
    %69 = arith.mulf %68, %68 : vector<32x128xf32>
    %cst_29 = arith.constant dense<0.000000e+00> : vector<32xf32>
    %70 = vector.multi_reduction <add>, %69, %cst_29 [1] : vector<32x128xf32> to vector<32xf32>
    %71 = vector.shape_cast %70 : vector<32xf32> to vector<32x1xf32>
    %cst_30 = arith.constant 1.280000e+02 : f32
    %72 = vector.broadcast %cst_30 : f32 to vector<32x1xf32>
    %73 = arith.divf %71, %72 : vector<32x1xf32>
    %cst_31 = arith.constant 9.99999974E-6 : f32
    %74 = vector.broadcast %cst_31 : f32 to vector<32x1xf32>
    %75 = arith.addf %73, %74 : vector<32x1xf32>
    %76 = math.rsqrt %75 : vector<32x1xf32>
    %77 = vector.broadcast %56 : vector<1x128xf32> to vector<32x128xf32>
    %78 = vector.broadcast %76 : vector<32x1xf32> to vector<32x128xf32>
    %79 = arith.mulf %77, %78 : vector<32x128xf32>
    %80 = arith.mulf %68, %79 : vector<32x128xf32>
    %81 = vector.broadcast %57 : vector<1x128xf32> to vector<32x128xf32>
    %82 = arith.addf %80, %81 : vector<32x128xf32>
    %83 = arith.truncf %82 : vector<32x128xf32> to vector<32x128xbf16>
    %c0_32 = arith.constant 0 : index
    %c0_33 = arith.constant 0 : index
    %84 = vector.load %arg4[%c0_32, %c0_33] : memref<128x64xbf16, #tpu.memory_space<vmem>>, vector<128x64xbf16>
    %c0_34 = arith.constant 0 : index
    %c1408 = arith.constant 1408 : index
    %85 = vector.load %arg6[%c0_34, %c1408] : memref<1x1920xf32, #tpu.memory_space<vmem>>, vector<1x64xf32>
    %c0_35 = arith.constant 0 : index
    %c1536 = arith.constant 1536 : index
    %86 = vector.load %arg6[%c0_35, %c1536] : memref<1x1920xf32, #tpu.memory_space<vmem>>, vector<1x64xf32>
    %c0_36 = arith.constant 0 : index
    %c1664 = arith.constant 1664 : index
    %87 = vector.load %arg6[%c0_36, %c1664] : memref<1x1920xf32, #tpu.memory_space<vmem>>, vector<1x64xf32>
    %cst_37 = arith.constant dense<0.000000e+00> : vector<32x64xf32>
    %88 = tpu.matmul %83, %84, %cst_37 {dimension_numbers = #tpu.dot_dimension_numbers<[1], [0], [0], [1], [0, 0, 1, 1], [], []>} : vector<32x128xbf16>, vector<128x64xbf16>, vector<32x64xf32> -> vector<32x64xf32>
    %89 = vector.broadcast %85 : vector<1x64xf32> to vector<32x64xf32>
    %90 = arith.addf %88, %89 : vector<32x64xf32>
    %cst_38 = arith.constant 0.000000e+00 : f32
    %91 = vector.broadcast %cst_38 : f32 to vector<32x64xf32>
    %92 = arith.maximumf %90, %91 : vector<32x64xf32>
    %cst_39 = arith.constant dense<0.000000e+00> : vector<32xf32>
    %93 = vector.multi_reduction <add>, %92, %cst_39 [1] : vector<32x64xf32> to vector<32xf32>
    %94 = vector.shape_cast %93 : vector<32xf32> to vector<32x1xf32>
    %cst_40 = arith.constant 6.400000e+01 : f32
    %95 = vector.broadcast %cst_40 : f32 to vector<32x1xf32>
    %96 = arith.divf %94, %95 : vector<32x1xf32>
    %97 = vector.broadcast %96 : vector<32x1xf32> to vector<32x64xf32>
    %98 = arith.subf %92, %97 : vector<32x64xf32>
    %99 = arith.mulf %98, %98 : vector<32x64xf32>
    %cst_41 = arith.constant dense<0.000000e+00> : vector<32xf32>
    %100 = vector.multi_reduction <add>, %99, %cst_41 [1] : vector<32x64xf32> to vector<32xf32>
    %101 = vector.shape_cast %100 : vector<32xf32> to vector<32x1xf32>
    %cst_42 = arith.constant 6.400000e+01 : f32
    %102 = vector.broadcast %cst_42 : f32 to vector<32x1xf32>
    %103 = arith.divf %101, %102 : vector<32x1xf32>
    %cst_43 = arith.constant 9.99999974E-6 : f32
    %104 = vector.broadcast %cst_43 : f32 to vector<32x1xf32>
    %105 = arith.addf %103, %104 : vector<32x1xf32>
    %106 = math.rsqrt %105 : vector<32x1xf32>
    %107 = vector.broadcast %86 : vector<1x64xf32> to vector<32x64xf32>
    %108 = vector.broadcast %106 : vector<32x1xf32> to vector<32x64xf32>
    %109 = arith.mulf %107, %108 : vector<32x64xf32>
    %110 = arith.mulf %98, %109 : vector<32x64xf32>
    %111 = vector.broadcast %87 : vector<1x64xf32> to vector<32x64xf32>
    %112 = arith.addf %110, %111 : vector<32x64xf32>
    %113 = arith.truncf %112 : vector<32x64xf32> to vector<32x64xbf16>
    %c0_44 = arith.constant 0 : index
    %c0_45 = arith.constant 0 : index
    %114 = vector.load %arg5[%c0_44, %c0_45] : memref<64x128xbf16, #tpu.memory_space<vmem>>, vector<64x128xbf16>
    %cst_46 = arith.constant dense<0.000000e+00> : vector<32x128xf32>
    %115 = tpu.matmul %113, %114, %cst_46 {dimension_numbers = #tpu.dot_dimension_numbers<[1], [0], [0], [1], [0, 0, 1, 1], [], []>} : vector<32x64xbf16>, vector<64x128xbf16>, vector<32x128xf32> -> vector<32x128xf32>
    %116 = vector.extract_strided_slice %115 {offsets = [0, 0], sizes = [32, 2], strides = [1, 1]} : vector<32x128xf32> to vector<32x2xf32>
    %c0_47 = arith.constant 0 : index
    %c1792 = arith.constant 1792 : index
    %117 = vector.load %arg6[%c0_47, %c1792] : memref<1x1920xf32, #tpu.memory_space<vmem>>, vector<1x128xf32>
    %118 = vector.extract_strided_slice %117 {offsets = [0, 0], sizes = [1, 2], strides = [1, 1]} : vector<1x128xf32> to vector<1x2xf32>
    %119 = vector.broadcast %118 : vector<1x2xf32> to vector<32x2xf32>
    %120 = arith.addf %116, %119 : vector<32x2xf32>
    %c0_48 = arith.constant 0 : index
    %c0_49 = arith.constant 0 : index
    %121 = vector.load %arg7[%c0_48, %c0_49] : memref<32x2xf32, #tpu.memory_space<vmem>>, vector<32x2xf32>
    tpu.vector_store %arg7[%c0_48, %c0_49], %120 {strides = array<i32>} : memref<32x2xf32, #tpu.memory_space<vmem>>, vector<32x2xf32>,
    return
  }
  func.func @transform_0(%arg0: i32) -> (i32, i32) {
    %c0_i32 = arith.constant 0 : i32
    %c0_i32_0 = arith.constant 0 : i32
    return %arg0, %c0_i32 : i32, i32
  }
  func.func @transform_1(%arg0: i32) -> (i32, i32) {
    %c0_i32 = arith.constant 0 : i32
    %c0_i32_0 = arith.constant 0 : i32
    %c0_i32_1 = arith.constant 0 : i32
    return %c0_i32, %c0_i32_0 : i32, i32
  }
  func.func @transform_2(%arg0: i32) -> (i32, i32) {
    %c0_i32 = arith.constant 0 : i32
    %c0_i32_0 = arith.constant 0 : i32
    %c0_i32_1 = arith.constant 0 : i32
    return %c0_i32, %c0_i32_0 : i32, i32
  }
  func.func @transform_3(%arg0: i32) -> (i32, i32) {
    %c0_i32 = arith.constant 0 : i32
    %c0_i32_0 = arith.constant 0 : i32
    %c0_i32_1 = arith.constant 0 : i32
    return %c0_i32, %c0_i32_0 : i32, i32
  }
  func.func @transform_4(%arg0: i32) -> (i32, i32) {
    %c0_i32 = arith.constant 0 : i32
    %c0_i32_0 = arith.constant 0 : i32
    %c0_i32_1 = arith.constant 0 : i32
    return %c0_i32, %c0_i32_0 : i32, i32
  }
  func.func @transform_5(%arg0: i32) -> (i32, i32) {
    %c0_i32 = arith.constant 0 : i32
    %c0_i32_0 = arith.constant 0 : i32
    %c0_i32_1 = arith.constant 0 : i32
    return %c0_i32, %c0_i32_0 : i32, i32
  }
  func.func @transform_6(%arg0: i32) -> (i32, i32) {
    %c0_i32 = arith.constant 0 : i32
    %c0_i32_0 = arith.constant 0 : i32
    return %arg0, %c0_i32 : i32, i32
  }
}

</mosaic_0001>

<bundles_post_ra>
// kernel: improved_adult_net.1
= control target key start
LH: loop header
LB: loop body
LE: loop exit
PB: predicated region body
PF: predicated region fallthrough
CT: control target
= control target key end

     0   :  { %11 = vsyncpa [#allocation3], 0  ;;  %s1346_s0 = inlined_call_operand.vmem [shape: f32[32,32], index: 0, kind: input, shape index: {}]   ;;  %s1347_s1 = inlined_call_operand.vmem [shape: bf16[32,256], index: 1, kind: input, shape index: {}]   ;;  %s1348_s2 = inlined_call_operand.hbm [shape: bf16[256,128], index: 2, kind: input, shape index: {}]   ;;  %s1349_s3 = inlined_call_operand.vmem [shape: bf16[128,64], index: 3, kind: input, shape index: {}]   ;;  %s1350_s4 = inlined_call_operand.vmem [shape: bf16[64,128], index: 4, kind: input, shape index: {}]   ;;  %s1351_s5 = inlined_call_operand.hbm [shape: f32[1,1920], index: 5, kind: input, shape index: {}]   ;;  %s1352_s6 = inlined_call_operand.vmem [shape: f32[32,2], index: 6, kind: output, shape index: {}]  }
   0x1   :  { %12 = vsyncpa [#allocation5], 0  ;;  %s1148_s21 = smov [#allocation2]  }
   0x2   :  { %s22_s22 = sshll.u32 %s1148_s21, 4  ;;  %s23_s22 = int_to_ptr.vmem [resolvable:$true] %s22_s22 }
   0x3   :  { %s1112_s23 = scalar_lea.vmem %s23_s22, 2048  ;;  %p1117_p1 = scmp.lt.s32.totalorder %s23_s22, %s23_s22 }
   0x4   :  { %p1113_p0 = scmp.ne.s32.totalorder %s23_s22, %s1112_s23  ;;  %p1118_p2 = scmp.lt.s32.totalorder %s1112_s23, %s1112_s23 }
   0x6   :  { %p1119_p3 = por %p1118_p2, %p1117_p1 }
   0x8   :  { %p1120_p4 = pnand %p1119_p3, %p1113_p0 }
   0xa   :  { %1123 = shalt.err (!%p1120_p4)
}
   0xb   :  { %s1149_s24 = smov 64   ;;  %s1150_s25 = smov 4  }
   0xc   :  { %28 = dma.hbm_to_vmem [thread:$0]  %s1348_s2, 2048, %s23_s22, [#allocation3], %s1149_s24, %s1149_s24, %s1150_s25  }
   0xd   :  { %s1151_s28 = smov [#allocation4]  }
   0xe   :  { %s39_s29 = sshll.u32 %s1151_s28, 4  ;;  %s40_s29 = int_to_ptr.vmem [resolvable:$true] %s39_s29 }
   0xf   :  { %s1132_s30 = scalar_lea.vmem %s40_s29, 240  ;;  %s1136_s7 = scalar_lea.vmem %s40_s29, 256 }
  0x10   :  { %p1133_p5 = scmp.ne.s32.totalorder %s40_s29, %s1132_s30  ;;  %p1137_p6 = scmp.lt.s32.totalorder %s40_s29, %s40_s29 }
  0x11   :  { %p1138_p7 = scmp.lt.s32.totalorder %s1136_s7, %s1132_s30 }
  0x13   :  { %p1139_p8 = por %p1138_p7, %p1137_p6 }
  0x15   :  { %p1140_p9 = pnand %p1139_p8, %p1133_p5 }
  0x17   :  { %1143 = shalt.err (!%p1140_p9)
}
  0x18   :  { %42 = dma.hbm_to_vmem [thread:$0]  %s1351_s5, 240, %s40_s29, [#allocation5]  }
  0x19   :  { %1144 = dma.done.wait [#allocation3], 2048  }
  0x1a   :  { %1145 = vsyncadd [#allocation3], 4294965248 }
  0x1b   :  { %1146 = dma.done.wait [#allocation5], 240  }
  0x1c   :  { %1147 = vsyncadd [#allocation5], 4294967056  ;;  %vm56_vm0 = vcmask 261120   ;;  %v50_v0 = vld [vmem:[%s1346_s0] sm:$0xff]  ;;  %v52_v1 = vld [vmem:[%s1346_s0 + $0x10] sm:$0xff]  ;;  %v1152_v31 = vmov 0  }
  0x1d   :  { %v51_v2 = vld [vmem:[%s1346_s0 + $0x8] sm:$0xff]  ;;  %v57_v3 = vsel %vm56_vm0, %v50_v0, 0.0  ;;  %v63_v4 = vsel %vm56_vm0, %v52_v1, 0.0  ;;  %v53_v5 = vld [vmem:[%s1346_s0 + $0x18] sm:$0xff]  ;;  %208 = vmatprep.mubr.bf16.mxu0 %v1152_v31  ;;  %v912_v45 = vld [vmem:[#allocation4] ss:$0 sm:$0xff] }
  0x1e   :  { %58 = vadd.xlane.f32.xlu0 %v57_v3  ;;  %64 = vadd.xlane.f32.xlu1 %v63_v4  ;;  %v60_v6 = vsel %vm56_vm0, %v51_v2, 0.0  ;;  %v66_v7 = vsel %vm56_vm0, %v53_v5, 0.0  ;;  %v1038_v28 = vld [vmem:[%s1347_s1 + $0x14] ss:$8 sps:$4 sm:$0xff]   ;;  %v1040_v29 = vld [vmem:[%s1347_s1 + $0x10] ss:$8 sps:$4 sm:$0xff]  }
  0x1f   :  { %v1041_v30 = vld [vmem:[%s1347_s1 + $0x4] ss:$8 sps:$4 sm:$0xff]   ;;  %188 = vmatprep.subr.bf16.mxu0 %v1038_v28  ;;  %v1043_v32 = vld [vmem:[%s1347_s1] ss:$8 sps:$4 sm:$0xff]   ;;  %vm727_vm1 = vcmask 523264   ;;  %vm901_vm2 = vcmask 15360  }
  0x20   :  { %189 = vmatpush1.bf16.msra.mxu0 %v1040_v29  ;;  %v913_v52 = vld [vmem:[#allocation4 + $0x1] ss:$0 sm:$0xff]  ;;  %v136_v4 = vld [vmem:[#allocation4 + $0x2] sm:$0x3] }
  0x21   :  { %190 = vmatprep.subr.bf16.mxu0 %v1041_v30 }
  0x22   :  { %61 = vadd.xlane.f32.xlu0 %v60_v6  ;;  %67 = vadd.xlane.f32.xlu1 %v66_v7 }
  0x24   :  { %191 = vmatpush1.bf16.msra.mxu0 %v1043_v32 }
  0xa7   :  { %v59_v8 = vpop.xlane.xlu0 %58  ;;  %v65_v9 = vpop.xlane.xlu1 %64 }
  0xa8   :  { %v70_v10 = vmul.f32 0.03125, %v59_v8  ;;  %v72_v11 = vmul.f32 0.03125, %v65_v9 }
  0xaa   :  { %v74_v12 = vsub.f32 %v50_v0, %v70_v10  ;;  %v76_v13 = vsub.f32 %v52_v1, %v72_v11  ;;  %v140_v1 = vlaneseq }
  0xab   :  { %v62_v14 = vpop.xlane.xlu0 %61  ;;  %v68_v15 = vpop.xlane.xlu1 %67 }
  0xac   :  { %v71_v16 = vmul.f32 0.03125, %v62_v14  ;;  %v73_v17 = vmul.f32 0.03125, %v68_v15  ;;  %v78_v18 = vmul.f32 %v74_v12, %v74_v12  ;;  %v80_v19 = vmul.f32 %v76_v13, %v76_v13 }
  0xae   :  { %v75_v20 = vsub.f32 %v51_v2, %v71_v16  ;;  %v77_v21 = vsub.f32 %v53_v5, %v73_v17  ;;  %v82_v22 = vsel %vm56_vm0, %v78_v18, 0.0  ;;  %v88_v23 = vsel %vm56_vm0, %v80_v19, 0.0 }
  0xaf   :  { %83 = vadd.xlane.f32.xlu0 %v82_v22  ;;  %v141_v2 = vshrl.u32 %v140_v1, 7 }
  0xb0   :  { %v79_v24 = vmul.f32 %v75_v20, %v75_v20  ;;  %v81_v25 = vmul.f32 %v77_v21, %v77_v21 }
  0xb1   :  { %v1228_v3 = vsub.s32 0, %v141_v2  ;;  %v1230_v5 = vsub.s32 1, %v141_v2  ;;  %v1046_v2 = vld [vmem:[#allocation2 + $0x70] sm:$0xff]  }
  0xb2   :  { %v85_v26 = vsel %vm56_vm0, %v79_v24, 0.0  ;;  %v91_v27 = vsel %vm56_vm0, %v81_v25, 0.0 }
  0xb3   :  { %89 = vadd.xlane.f32.xlu0 %v88_v23  ;;  %86 = vadd.xlane.f32.xlu1 %v85_v26  ;;  %v143_v6 = vrot.slane %v136_v4, %v1228_v3  ;;  %v147_v7 = vrot.slane %v136_v4, %v1230_v5  ;;  %v1047_v4 = vld [vmem:[#allocation2 + $0x30] sm:$0xff]  }
  0xb7   :  { %92 = vadd.xlane.f32.xlu1 %v91_v27 }
 0x138   :  { %v84_v33 = vpop.xlane.xlu0 %83 }
 0x139   :  { %v94_v34 = vmul.f32 0.03125, %v84_v33 }
 0x13b   :  { %v98_v35 = vadd.f32 1e-05, %v94_v34 }
 0x13c   :  { %v87_v36 = vpop.xlane.xlu1 %86  ;;  %v90_v37 = vpop.xlane.xlu0 %89 }
 0x13d   :  { %1072 = vrsqrt.f32 %v98_v35  ;;  %v95_v38 = vmul.f32 0.03125, %v87_v36  ;;  %v96_v39 = vmul.f32 0.03125, %v90_v37  ;;  %v1044_v36 = vld [vmem:[#allocation2 + $0x78] sm:$0xff]  }
 0x13e   :  { %957 = vmatprep.subr.bf16.mxu1 %v1044_v36 }
 0x13f   :  { %v99_v40 = vadd.f32 1e-05, %v95_v38  ;;  %v100_v41 = vadd.f32 1e-05, %v96_v39 }
 0x140   :  { %v93_v42 = vpop.xlane.xlu1 %92 }
 0x141   :  { %1074 = vrsqrt.f32 %v99_v40  ;;  %v97_v43 = vmul.f32 0.03125, %v93_v42 }
 0x142   :  { %1076 = vrsqrt.f32 %v100_v41 }
 0x143   :  { %v101_v44 = vadd.f32 1e-05, %v97_v43 }
 0x145   :  { %1078 = vrsqrt.f32 %v101_v44 }
 0x14a   :  { %v1073_v46 = vpop.eup %1072 }
 0x14b   :  { %v112_v47 = vmul.f32 %v1073_v46, %v912_v45 }
 0x14d   :  { %v116_v50 = vmul.f32 %v112_v47, %v74_v12 }
 0x14e   :  { %v1075_v48 = vpop.eup %1074 }
 0x14f   :  { %v113_v49 = vmul.f32 %v1075_v48, %v912_v45  ;;  %v1077_v51 = vpop.eup %1076  ;;  %v126_v55 = vadd.f32 %v913_v52, %v116_v50 }
 0x150   :  { %v114_v57 = vmul.f32 %v1077_v51, %v912_v45 }
 0x151   :  { %v117_v53 = vmul.f32 %v113_v49, %v75_v20 }
 0x152   :  { %v1079_v54 = vpop.eup %1078  ;;  %v118_v61 = vmul.f32 %v114_v57, %v76_v13 }
 0x153   :  { %v127_v56 = vadd.f32 %v913_v52, %v117_v53  ;;  %v115_v58 = vmul.f32 %v1079_v54, %v912_v45 }
 0x154   :  { %v128_v63 = vadd.f32 %v913_v52, %v118_v61 }
 0x155   :  { %v130_v59 = vpack.c.bf16 %v127_v56, %v126_v55  ;;  %v119_v60 = vmul.f32 %v115_v58, %v77_v21 }
 0x157   :  { %918 = vmatmul.mubr.msk.bf16.vlgmr.msra.gmra.mxu0 %vm56_vm0, %v130_v59  ;;  %v129_v62 = vadd.f32 %v913_v52, %v119_v60 }
 0x158   :  { %218 = vmatprep.mubr.bf16.mxu0 %v1152_v31 }
 0x159   :  { %v131_v0 = vpack.c.bf16 %v129_v62, %v128_v63 }
 0x15f   :  { %919 = vmatmul.mubr.msk.bf16.gmra.mxu0 %vm56_vm0, %v131_v0  ;;  %v1045_v0 = vld [vmem:[#allocation2 + $0x38] sm:$0xff]  }
 0x160   :  { %958 = vmatpush3.bf16.msra.mxu1 %v1045_v0 }
 0x161   :  { %959 = vmatprep.subr.bf16.mxu1 %v1046_v2 }
 0x164   :  { %960 = vmatpush3.bf16.msra.mxu1 %v1047_v4 }
 0x217   :  { %v210_v8 = vpop.f32.mrf.mxu0 }
 0x218   :  { %v211_v9 = vadd.f32 %v210_v8, %v143_v6  ;;  %v1050_v8 = vld [vmem:[#allocation2 + $0x60] sm:$0xff]  }
 0x219   :  { %v212_v10 = vpop.f32.mrf.mxu0 }
 0x21a   :  { %v213_v11 = vadd.f32 %v212_v10, %v147_v7  ;;  %v229_v13 = vmax.f32 %v211_v9, 0.0  ;;  %v1051_v9 = vld [vmem:[#allocation2 + $0x20] sm:$0xff]   ;;  %v1052_v10 = vld [vmem:[#allocation2 + $0x58] sm:$0xff]  }
 0x21b   :  { %v214_v12 = vpop.f32.mrf.mxu0 }
 0x21c   :  { %v230_v14 = vmax.f32 %v213_v11, 0.0  ;;  %v215_v15 = vadd.f32 %v214_v12, %v143_v6  ;;  %v1053_v11 = vld [vmem:[#allocation2 + $0x18] sm:$0xff]   ;;  %v1054_v12 = vld [vmem:[#allocation2 + $0x50] sm:$0xff]  }
 0x21d   :  { %v216_v16 = vpop.f32.mrf.mxu0 }
 0x21e   :  { %v217_v17 = vadd.f32 %v216_v16, %v147_v7  ;;  %v237_v18 = vadd.f32 %v230_v14, %v229_v13  ;;  %v231_v20 = vmax.f32 %v215_v15, 0.0  ;;  %v1057_v15 = vld [vmem:[#allocation2 + $0x8] sm:$0xff]   ;;  %v1058_v16 = vld [vmem:[#allocation2 + $0x40] sm:$0xff]  }
 0x21f   :  { %v220_v19 = vpop.f32.mrf.mxu0 }
 0x220   :  { %v232_v21 = vmax.f32 %v217_v17, 0.0  ;;  %v221_v22 = vadd.f32 %v220_v19, %v143_v6  ;;  %238 = vadd.xlane.f32.xlu0 %v237_v18  ;;  %v1059_v17 = vld [vmem:[#allocation2] sm:$0xff]  }
 0x221   :  { %v222_v23 = vpop.f32.mrf.mxu0 }
 0x222   :  { %v223_v24 = vadd.f32 %v222_v23, %v147_v7  ;;  %v240_v25 = vadd.f32 %v232_v21, %v231_v20  ;;  %v233_v27 = vmax.f32 %v221_v22, 0.0 }
 0x223   :  { %v224_v26 = vpop.f32.mrf.mxu0 }
 0x224   :  { %v234_v28 = vmax.f32 %v223_v24, 0.0  ;;  %v225_v29 = vadd.f32 %v224_v26, %v143_v6  ;;  %241 = vadd.xlane.f32.xlu1 %v240_v25  ;;  %v1048_v6 = vld [vmem:[#allocation2 + $0x68] sm:$0xff]  }
 0x225   :  { %v226_v30 = vpop.f32.mrf.mxu0  ;;  %961 = vmatprep.subr.bf16.mxu1 %v1048_v6 }
 0x226   :  { %v227_v31 = vadd.f32 %v226_v30, %v147_v7  ;;  %v243_v32 = vadd.f32 %v234_v28, %v233_v27  ;;  %v235_v33 = vmax.f32 %v225_v29, 0.0  ;;  %v1049_v7 = vld [vmem:[#allocation2 + $0x28] sm:$0xff]  }
 0x227   :  { %962 = vmatpush3.bf16.msra.mxu1 %v1049_v7 }
 0x228   :  { %v236_v34 = vmax.f32 %v227_v31, 0.0  ;;  %244 = vadd.xlane.f32.xlu0 %v243_v32  ;;  %963 = vmatprep.subr.bf16.mxu1 %v1050_v8 }
 0x22a   :  { %v246_v35 = vadd.f32 %v236_v34, %v235_v33 }
 0x22b   :  { %964 = vmatpush3.bf16.msra.mxu1 %v1051_v9 }
 0x22c   :  { %247 = vadd.xlane.f32.xlu1 %v246_v35  ;;  %965 = vmatprep.subr.bf16.mxu1 %v1052_v10  ;;  %v920_v10 = vld [vmem:[#allocation4 + $0x8] ss:$0 sm:$0xff] }
 0x22f   :  { %966 = vmatpush3.bf16.msra.mxu1 %v1053_v11 }
 0x230   :  { %967 = vmatprep.subr.bf16.mxu1 %v1054_v12 }
 0x2a9   :  { %v239_v37 = vpop.xlane.xlu0 %238 }
 0x2aa   :  { %v250_v38 = vmul.f32 0.00390625, %v239_v37 }
 0x2ac   :  { %v1234_v39 = vsub.f32 %v229_v13, %v250_v38  ;;  %v1236_v40 = vsub.f32 %v230_v14, %v250_v38  ;;  %v1055_v13 = vld [vmem:[#allocation2 + $0x10] sm:$0xff]   ;;  %v1056_v14 = vld [vmem:[#allocation2 + $0x48] sm:$0xff]  }
 0x2ad   :  { %v242_v41 = vpop.xlane.xlu1 %241  ;;  %968 = vmatpush3.bf16.msra.mxu1 %v1055_v13 }
 0x2ae   :  { %v251_v42 = vmul.f32 0.00390625, %v242_v41  ;;  %v262_v43 = vmul.f32 %v1234_v39, %v1234_v39  ;;  %v263_v44 = vmul.f32 %v1236_v40, %v1236_v40  ;;  %969 = vmatprep.subr.bf16.mxu1 %v1056_v14 }
 0x2b0   :  { %v1242_v45 = vsub.f32 %v231_v20, %v251_v42  ;;  %v1244_v46 = vsub.f32 %v232_v21, %v251_v42  ;;  %v270_v47 = vadd.f32 %v263_v44, %v262_v43 }
 0x2b1   :  { %v245_v48 = vpop.xlane.xlu0 %244  ;;  %970 = vmatpush3.bf16.msra.mxu1 %v1057_v15 }
 0x2b2   :  { %v252_v49 = vmul.f32 0.00390625, %v245_v48  ;;  %271 = vadd.xlane.f32.xlu0 %v270_v47  ;;  %v264_v50 = vmul.f32 %v1242_v45, %v1242_v45  ;;  %v265_v51 = vmul.f32 %v1244_v46, %v1244_v46  ;;  %971 = vmatprep.subr.bf16.mxu1 %v1058_v16 }
 0x2b4   :  { %v1250_v52 = vsub.f32 %v233_v27, %v252_v49  ;;  %v1252_v53 = vsub.f32 %v234_v28, %v252_v49  ;;  %v273_v54 = vadd.f32 %v265_v51, %v264_v50  ;;  %v137_v28 = vld [vmem:[#allocation4 + $0x4] sm:$0x3] }
 0x2b5   :  { %v248_v55 = vpop.xlane.xlu1 %247  ;;  %972 = vmatpush3.bf16.msra.mxu1 %v1059_v17  ;;  %v298_v31 = vrot.slane %v137_v28, %v1228_v3  ;;  %v302_v32 = vrot.slane %v137_v28, %v1230_v5 }
 0x2b6   :  { %v253_v56 = vmul.f32 0.00390625, %v248_v55  ;;  %274 = vadd.xlane.f32.xlu1 %v273_v54  ;;  %v266_v57 = vmul.f32 %v1250_v52, %v1250_v52  ;;  %v267_v58 = vmul.f32 %v1252_v53, %v1252_v53 }
 0x2b8   :  { %v1258_v59 = vsub.f32 %v235_v33, %v253_v56  ;;  %v1260_v60 = vsub.f32 %v236_v34, %v253_v56  ;;  %v276_v61 = vadd.f32 %v267_v58, %v266_v57  ;;  %v138_v34 = vld [vmem:[#allocation4 + $0x6] sm:$0x3] }
 0x2b9   :  { %v325_v41 = vrot.slane %v138_v34, %v1228_v3  ;;  %v329_v42 = vrot.slane %v138_v34, %v1230_v5 }
 0x2ba   :  { %277 = vadd.xlane.f32.xlu0 %v276_v61  ;;  %v268_v62 = vmul.f32 %v1258_v59, %v1258_v59  ;;  %v269_v63 = vmul.f32 %v1260_v60, %v1260_v60 }
 0x2bc   :  { %v279_v1 = vadd.f32 %v269_v63, %v268_v62 }
 0x2be   :  { %280 = vadd.xlane.f32.xlu1 %v279_v1 }
 0x33b   :  { %v272_v18 = vpop.xlane.xlu0 %271 }
 0x33c   :  { %v282_v19 = vmul.f32 0.00390625, %v272_v18 }
 0x33e   :  { %v286_v20 = vadd.f32 1e-05, %v282_v19 }
 0x33f   :  { %v275_v21 = vpop.xlane.xlu1 %274 }
 0x340   :  { %1080 = vrsqrt.f32 %v286_v20  ;;  %v283_v22 = vmul.f32 0.00390625, %v275_v21 }
 0x342   :  { %v287_v23 = vadd.f32 1e-05, %v283_v22 }
 0x343   :  { %v278_v24 = vpop.xlane.xlu0 %277 }
 0x344   :  { %1082 = vrsqrt.f32 %v287_v23  ;;  %v284_v25 = vmul.f32 0.00390625, %v278_v24 }
 0x346   :  { %v288_v26 = vadd.f32 1e-05, %v284_v25 }
 0x347   :  { %v281_v27 = vpop.xlane.xlu1 %280 }
 0x348   :  { %1084 = vrsqrt.f32 %v288_v26  ;;  %v285_v29 = vmul.f32 0.00390625, %v281_v27 }
 0x34a   :  { %v289_v30 = vadd.f32 1e-05, %v285_v29 }
 0x34c   :  { %1086 = vrsqrt.f32 %v289_v30 }
 0x34d   :  { %v1081_v33 = vpop.eup %1080 }
 0x34e   :  { %v306_v35 = vmul.f32 %v1081_v33, %v302_v32  ;;  %v305_v36 = vmul.f32 %v1081_v33, %v298_v31 }
 0x350   :  { %v314_v38 = vmul.f32 %v306_v35, %v1236_v40  ;;  %v313_v43 = vmul.f32 %v305_v36, %v1234_v39 }
 0x351   :  { %v1083_v37 = vpop.eup %1082 }
 0x352   :  { %v308_v44 = vmul.f32 %v1083_v37, %v302_v32  ;;  %v307_v47 = vmul.f32 %v1083_v37, %v298_v31  ;;  %v333_v51 = vadd.f32 %v329_v42, %v314_v38  ;;  %v332_v54 = vadd.f32 %v325_v41, %v313_v43  ;;  %v1060_v43 = vld [vmem:[%s1349_s3 + $0x38] sm:$0xff]  }
 0x353   :  { %1001 = vmatprep.subr.bf16.mxu0 %v1060_v43 }
 0x354   :  { %v316_v48 = vmul.f32 %v308_v44, %v1244_v46  ;;  %v315_v49 = vmul.f32 %v307_v47, %v1242_v45  ;;  %1002 = vmatpush3.bf16.msra.mxu0 %v1060_v43  ;;  %v1061_v44 = vld [vmem:[%s1349_s3 + $0x30] sm:$0xff]   ;;  %v1062_v47 = vld [vmem:[%s1349_s3 + $0x28] sm:$0xff]  }
 0x355   :  { %v1085_v50 = vpop.eup %1084  ;;  %1003 = vmatprep.subr.bf16.mxu0 %v1061_v44 }
 0x356   :  { %v335_v55 = vadd.f32 %v329_v42, %v316_v48  ;;  %v334_v56 = vadd.f32 %v325_v41, %v315_v49  ;;  %v310_v57 = vmul.f32 %v1085_v50, %v302_v32  ;;  %v309_v58 = vmul.f32 %v1085_v50, %v298_v31  ;;  %v1063_v48 = vld [vmem:[%s1349_s3 + $0x20] sm:$0xff]   ;;  %v1064_v49 = vld [vmem:[%s1349_s3 + $0x18] sm:$0xff]   ;;  %v1065_v50 = vld [vmem:[%s1349_s3 + $0x10] sm:$0xff]  }
 0x358   :  { %v341_v40 = vpack.c.bf16 %v335_v55, %v333_v51  ;;  %v340_v61 = vpack.c.bf16 %v334_v56, %v332_v54  ;;  %v318_v39 = vmul.f32 %v310_v57, %v1252_v53  ;;  %v317_v63 = vmul.f32 %v309_v58, %v1250_v52  ;;  %1004 = vmatpush3.bf16.msra.mxu0 %v1061_v44  ;;  %v1066_v51 = vld [vmem:[%s1349_s3 + $0x8] sm:$0xff]   ;;  %v1067_v54 = vld [vmem:[%s1349_s3] sm:$0xff]  }
 0x359   :  { %v1087_v3 = vpop.eup %1086  ;;  %1005 = vmatprep.subr.bf16.mxu0 %v1062_v47 }
 0x35a   :  { %513 = vmatprep.mubr.bf16.mxu1 %v341_v40  ;;  %v312_v5 = vmul.f32 %v1087_v3, %v302_v32  ;;  %v311_v62 = vmul.f32 %v1087_v3, %v298_v31  ;;  %v337_v0 = vadd.f32 %v329_v42, %v318_v39  ;;  %v336_v2 = vadd.f32 %v325_v41, %v317_v63 }
 0x35b   :  { %514 = vmatmul.mubr.bf16.vlgmr.msra.gmra.mxu1 %v340_v61 }
 0x35c   :  { %v320_v45 = vmul.f32 %v312_v5, %v1260_v60  ;;  %v319_v46 = vmul.f32 %v311_v62, %v1258_v59  ;;  %1006 = vmatpush3.bf16.msra.mxu0 %v1062_v47 }
 0x35d   :  { %1007 = vmatprep.subr.bf16.mxu0 %v1063_v48 }
 0x35e   :  { %v339_v1 = vadd.f32 %v329_v42, %v320_v45  ;;  %v338_v4 = vadd.f32 %v325_v41, %v319_v46  ;;  %v937_v46 = vld [vmem:[#allocation4 + $0x9] ss:$0 sm:$0xff] }
 0x360   :  { %v343_v6 = vpack.c.bf16 %v339_v1, %v337_v0  ;;  %v342_v7 = vpack.c.bf16 %v338_v4, %v336_v2  ;;  %1008 = vmatpush3.bf16.msra.mxu0 %v1063_v48 }
 0x361   :  { %1009 = vmatprep.subr.bf16.mxu0 %v1064_v49 }
 0x362   :  { %521 = vmatprep.mubr.bf16.mxu1 %v343_v6 }
 0x363   :  { %522 = vmatmul.mubr.bf16.gmra.mxu1 %v342_v7  ;;  %v938_v7 = vld [vmem:[#allocation4 + $0xa] ss:$0 sm:$0xff] }
 0x364   :  { %1010 = vmatpush3.bf16.msra.mxu0 %v1064_v49 }
 0x365   :  { %1011 = vmatprep.subr.bf16.mxu0 %v1065_v50 }
 0x368   :  { %1012 = vmatpush3.bf16.msra.mxu0 %v1065_v50 }
 0x369   :  { %1013 = vmatprep.subr.bf16.mxu0 %v1066_v51 }
 0x36c   :  { %1014 = vmatpush3.bf16.msra.mxu0 %v1066_v51 }
 0x36d   :  { %1015 = vmatprep.subr.bf16.mxu0 %v1067_v54 }
 0x370   :  { %1016 = vmatpush3.bf16.msra.mxu0 %v1067_v54 }
 0x41b   :  { %v973_v8 = vpop.f32.mrf.mxu1 }
 0x41d   :  { %v974_v9 = vpop.f32.mrf.mxu1 }
 0x41e   :  { %v975_v53 = vadd.f32 %v974_v9, %v973_v8 }
 0x41f   :  { %v976_v11 = vpop.f32.mrf.mxu1 }
 0x420   :  { %v516_v12 = vadd.f32 %v975_v53, %v920_v10 }
 0x421   :  { %v977_v52 = vpop.f32.mrf.mxu1 }
 0x422   :  { %v978_v13 = vadd.f32 %v977_v52, %v976_v11  ;;  %v530_v14 = vmax.f32 %v516_v12, 0.0 }
 0x423   :  { %v979_v60 = vpop.f32.mrf.mxu1 }
 0x424   :  { %534 = vadd.xlane.f32.xlu0 %v530_v14  ;;  %v519_v59 = vadd.f32 %v978_v13, %v920_v10 }
 0x425   :  { %v980_v15 = vpop.f32.mrf.mxu1 }
 0x426   :  { %v981_v16 = vadd.f32 %v980_v15, %v979_v60  ;;  %v531_v17 = vmax.f32 %v519_v59, 0.0 }
 0x427   :  { %v982_v18 = vpop.f32.mrf.mxu1 }
 0x428   :  { %536 = vadd.xlane.f32.xlu1 %v531_v17  ;;  %v524_v19 = vadd.f32 %v981_v16, %v920_v10 }
 0x429   :  { %v983_v20 = vpop.f32.mrf.mxu1 }
 0x42a   :  { %v984_v21 = vadd.f32 %v983_v20, %v982_v18  ;;  %v532_v22 = vmax.f32 %v524_v19, 0.0  ;;  %v939_v18 = vld [vmem:[#allocation4 + $0xb] ss:$0 sm:$0xff] }
 0x42c   :  { %538 = vadd.xlane.f32.xlu0 %v532_v22  ;;  %v527_v23 = vadd.f32 %v984_v21, %v920_v10 }
 0x42e   :  { %v533_v24 = vmax.f32 %v527_v23, 0.0 }
 0x430   :  { %540 = vadd.xlane.f32.xlu1 %v533_v24 }
 0x4ad   :  { %v535_v25 = vpop.xlane.xlu0 %534 }
 0x4ae   :  { %v543_v26 = vmul.f32 0.0078125, %v535_v25 }
 0x4b0   :  { %v1278_v27 = vsub.f32 %v530_v14, %v543_v26 }
 0x4b1   :  { %v537_v28 = vpop.xlane.xlu1 %536 }
 0x4b2   :  { %v544_v29 = vmul.f32 0.0078125, %v537_v28  ;;  %v551_v30 = vmul.f32 %v1278_v27, %v1278_v27 }
 0x4b4   :  { %v548_v31 = vsub.f32 %v531_v17, %v544_v29  ;;  %555 = vadd.xlane.f32.xlu0 %v551_v30 }
 0x4b5   :  { %v539_v32 = vpop.xlane.xlu0 %538 }
 0x4b6   :  { %v545_v33 = vmul.f32 0.0078125, %v539_v32  ;;  %v552_v34 = vmul.f32 %v548_v31, %v548_v31 }
 0x4b8   :  { %v1282_v35 = vsub.f32 %v532_v22, %v545_v33  ;;  %557 = vadd.xlane.f32.xlu1 %v552_v34 }
 0x4b9   :  { %v541_v36 = vpop.xlane.xlu1 %540 }
 0x4ba   :  { %v546_v37 = vmul.f32 0.0078125, %v541_v36  ;;  %v553_v38 = vmul.f32 %v1282_v35, %v1282_v35 }
 0x4bc   :  { %v550_v41 = vsub.f32 %v533_v24, %v546_v37  ;;  %559 = vadd.xlane.f32.xlu0 %v553_v38 }
 0x4be   :  { %v554_v42 = vmul.f32 %v550_v41, %v550_v41 }
 0x4c0   :  { %561 = vadd.xlane.f32.xlu1 %v554_v42 }
 0x53d   :  { %v556_v55 = vpop.xlane.xlu0 %555 }
 0x53e   :  { %v563_v56 = vmul.f32 0.0078125, %v556_v55 }
 0x540   :  { %v567_v57 = vadd.f32 1e-05, %v563_v56 }
 0x541   :  { %v558_v58 = vpop.xlane.xlu1 %557 }
 0x542   :  { %1088 = vrsqrt.f32 %v567_v57  ;;  %v564_v40 = vmul.f32 0.0078125, %v558_v58 }
 0x544   :  { %v568_v61 = vadd.f32 1e-05, %v564_v40 }
 0x545   :  { %v560_v3 = vpop.xlane.xlu0 %559 }
 0x546   :  { %1090 = vrsqrt.f32 %v568_v61  ;;  %v565_v5 = vmul.f32 0.0078125, %v560_v3  ;;  %v1068_v61 = vld [vmem:[%s1350_s4 + $0x18] sm:$0xff]   ;;  %v1069_v3 = vld [vmem:[%s1350_s4 + $0x10] sm:$0xff]  }
 0x547   :  { %1021 = vmatprep.subr.bf16.mxu1 %v1068_v61 }
 0x548   :  { %v569_v39 = vadd.f32 1e-05, %v565_v5  ;;  %1022 = vmatpush3.bf16.msra.mxu1 %v1068_v61  ;;  %v1070_v5 = vld [vmem:[%s1350_s4 + $0x8] sm:$0xff]  }
 0x549   :  { %v562_v62 = vpop.xlane.xlu1 %561  ;;  %1023 = vmatprep.subr.bf16.mxu1 %v1069_v3 }
 0x54a   :  { %1092 = vrsqrt.f32 %v569_v39  ;;  %v566_v63 = vmul.f32 0.0078125, %v562_v62  ;;  %v1071_v39 = vld [vmem:[%s1350_s4] sm:$0xff]  }
 0x54c   :  { %v570_v45 = vadd.f32 1e-05, %v566_v63  ;;  %1024 = vmatpush3.bf16.msra.mxu1 %v1069_v3 }
 0x54d   :  { %1025 = vmatprep.subr.bf16.mxu1 %v1070_v5 }
 0x54e   :  { %1094 = vrsqrt.f32 %v570_v45 }
 0x54f   :  { %v1089_v0 = vpop.eup %1088 }
 0x550   :  { %v581_v1 = vmul.f32 %v1089_v0, %v937_v46  ;;  %1026 = vmatpush3.bf16.msra.mxu1 %v1070_v5 }
 0x551   :  { %1027 = vmatprep.subr.bf16.mxu1 %v1071_v39 }
 0x552   :  { %v585_v6 = vmul.f32 %v581_v1, %v1278_v27 }
 0x553   :  { %v1091_v2 = vpop.eup %1090 }
 0x554   :  { %v582_v4 = vmul.f32 %v1091_v2, %v937_v46  ;;  %v595_v10 = vadd.f32 %v938_v7, %v585_v6  ;;  %1028 = vmatpush3.bf16.msra.mxu1 %v1071_v39 }
 0x556   :  { %v586_v8 = vmul.f32 %v582_v4, %v548_v31 }
 0x557   :  { %v1093_v9 = vpop.eup %1092 }
 0x558   :  { %v596_v53 = vadd.f32 %v938_v7, %v586_v8  ;;  %v583_v11 = vmul.f32 %v1093_v9, %v937_v46 }
 0x55a   :  { %v599_v12 = vpack.c.bf16 %v596_v53, %v595_v10  ;;  %v587_v14 = vmul.f32 %v583_v11, %v1282_v35  ;;  %v948_v10 = vld [vmem:[#allocation4 + $0xc] ss:$0 sm:$0xff] }
 0x55b   :  { %v1095_v52 = vpop.eup %1094 }
 0x55c   :  { %1017 = vmatprep.mubr.bf16.mxu0 %v599_v12  ;;  %v584_v13 = vmul.f32 %v1095_v52, %v937_v46  ;;  %v597_v59 = vadd.f32 %v938_v7, %v587_v14 }
 0x55e   :  { %v588_v60 = vmul.f32 %v584_v13, %v550_v41 }
 0x560   :  { %v598_v15 = vadd.f32 %v938_v7, %v588_v60 }
 0x562   :  { %v600_v16 = vpack.c.bf16 %v598_v15, %v597_v59  ;;  %v949_v59 = vld [vmem:[#allocation4 + $0xd] ss:$0 sm:$0xff] }
 0x564   :  { %1018 = vmatmul.mubr.bf16.vlgmr.msra.gmra.mxu0 %v600_v16 }
 0x624   :  { %v1019_v17 = vpop.f32.mrf.mxu0 }
 0x625   :  { %v717_v20 = vadd.f32 %v1019_v17, %v939_v18 }
 0x626   :  { %v708_v19 = vpop.f32.mrf.mxu0 }
 0x627   :  { %v709_v21 = vadd.f32 %v939_v18, %v708_v19  ;;  %v725_v25 = vmax.f32 %v717_v20, 0.0 }
 0x628   :  { %v1020_v22 = vpop.f32.mrf.mxu0 }
 0x629   :  { %v723_v23 = vmax.f32 %v709_v21, 0.0  ;;  %v720_v26 = vadd.f32 %v1020_v22, %v939_v18  ;;  %v734_v32 = vsel %vm727_vm1, %v725_v25, 0.0 }
 0x62a   :  { %v711_v24 = vpop.f32.mrf.mxu0 }
 0x62b   :  { %v712_v27 = vadd.f32 %v939_v18, %v711_v24  ;;  %v728_v28 = vsel %vm727_vm1, %v723_v23, 0.0  ;;  %v726_v30 = vmax.f32 %v720_v26, 0.0  ;;  %v956_v26 = vld [vmem:[#allocation4 + $0xe] ss:$0 sm:$0xff] }
 0x62c   :  { %729 = vadd.xlane.f32.xlu0 %v728_v28 }
 0x62d   :  { %v724_v29 = vmax.f32 %v712_v27, 0.0  ;;  %v737_v33 = vsel %vm727_vm1, %v726_v30, 0.0 }
 0x62f   :  { %v731_v31 = vsel %vm727_vm1, %v724_v29, 0.0 }
 0x630   :  { %732 = vadd.xlane.f32.xlu1 %v731_v31  ;;  %735 = vadd.xlane.f32.xlu0 %v734_v32 }
 0x634   :  { %738 = vadd.xlane.f32.xlu1 %v737_v33 }
 0x6b5   :  { %v730_v34 = vpop.xlane.xlu0 %729 }
 0x6b6   :  { %v741_v35 = vmul.f32 0.015625, %v730_v34 }
 0x6b8   :  { %v745_v36 = vsub.f32 %v723_v23, %v741_v35 }
 0x6b9   :  { %v733_v37 = vpop.xlane.xlu1 %732  ;;  %v736_v38 = vpop.xlane.xlu0 %735 }
 0x6ba   :  { %v742_v41 = vmul.f32 0.015625, %v733_v37  ;;  %v743_v42 = vmul.f32 0.015625, %v736_v38  ;;  %v749_v43 = vmul.f32 %v745_v36, %v745_v36 }
 0x6bc   :  { %v746_v44 = vsub.f32 %v724_v29, %v742_v41  ;;  %v747_v47 = vsub.f32 %v725_v25, %v743_v42  ;;  %v753_v48 = vsel %vm727_vm1, %v749_v43, 0.0 }
 0x6bd   :  { %v739_v49 = vpop.xlane.xlu1 %738  ;;  %754 = vadd.xlane.f32.xlu0 %v753_v48 }
 0x6be   :  { %v744_v50 = vmul.f32 0.015625, %v739_v49  ;;  %v750_v51 = vmul.f32 %v746_v44, %v746_v44  ;;  %v751_v54 = vmul.f32 %v747_v47, %v747_v47 }
 0x6c0   :  { %v748_v55 = vsub.f32 %v726_v30, %v744_v50  ;;  %v756_v56 = vsel %vm727_vm1, %v750_v51, 0.0  ;;  %v759_v57 = vsel %vm727_vm1, %v751_v54, 0.0 }
 0x6c1   :  { %757 = vadd.xlane.f32.xlu1 %v756_v56  ;;  %760 = vadd.xlane.f32.xlu0 %v759_v57 }
 0x6c2   :  { %v752_v58 = vmul.f32 %v748_v55, %v748_v55 }
 0x6c4   :  { %v762_v40 = vsel %vm727_vm1, %v752_v58, 0.0 }
 0x6c5   :  { %763 = vadd.xlane.f32.xlu1 %v762_v40 }
 0x746   :  { %v755_v62 = vpop.xlane.xlu0 %754 }
 0x747   :  { %v765_v63 = vmul.f32 0.015625, %v755_v62 }
 0x749   :  { %v769_v45 = vadd.f32 1e-05, %v765_v63 }
 0x74a   :  { %v758_v46 = vpop.xlane.xlu1 %757  ;;  %v761_v0 = vpop.xlane.xlu0 %760 }
 0x74b   :  { %1096 = vrsqrt.f32 %v769_v45  ;;  %v766_v1 = vmul.f32 0.015625, %v758_v46  ;;  %v767_v2 = vmul.f32 0.015625, %v761_v0 }
 0x74d   :  { %v770_v4 = vadd.f32 1e-05, %v766_v1  ;;  %v771_v6 = vadd.f32 1e-05, %v767_v2 }
 0x74e   :  { %v764_v7 = vpop.xlane.xlu1 %763 }
 0x74f   :  { %1098 = vrsqrt.f32 %v770_v4  ;;  %v768_v8 = vmul.f32 0.015625, %v764_v7 }
 0x750   :  { %1100 = vrsqrt.f32 %v771_v6 }
 0x751   :  { %v772_v9 = vadd.f32 1e-05, %v768_v8 }
 0x753   :  { %1102 = vrsqrt.f32 %v772_v9 }
 0x758   :  { %v1097_v53 = vpop.eup %1096 }
 0x759   :  { %v783_v11 = vmul.f32 %v1097_v53, %v948_v10 }
 0x75b   :  { %v787_v14 = vmul.f32 %v783_v11, %v745_v36 }
 0x75c   :  { %v1099_v12 = vpop.eup %1098 }
 0x75d   :  { %v1101_v52 = vpop.eup %1100  ;;  %v784_v13 = vmul.f32 %v1099_v12, %v948_v10  ;;  %v797_v19 = vadd.f32 %v949_v59, %v787_v14 }
 0x75e   :  { %v785_v60 = vmul.f32 %v1101_v52, %v948_v10 }
 0x75f   :  { %v788_v15 = vmul.f32 %v784_v13, %v746_v44 }
 0x760   :  { %v1103_v16 = vpop.eup %1102  ;;  %v789_v17 = vmul.f32 %v785_v60, %v747_v47 }
 0x761   :  { %v786_v18 = vmul.f32 %v1103_v16, %v948_v10  ;;  %v798_v20 = vadd.f32 %v949_v59, %v788_v15 }
 0x762   :  { %v799_v23 = vadd.f32 %v949_v59, %v789_v17 }
 0x763   :  { %v790_v21 = vmul.f32 %v786_v18, %v748_v55  ;;  %v801_v22 = vpack.c.bf16 %v798_v20, %v797_v19 }
 0x765   :  { %v800_v24 = vadd.f32 %v949_v59, %v790_v21  ;;  %1029 = vmatprep.mubr.msk.bf16.mxu1 %vm727_vm1, %v801_v22 }
 0x767   :  { %v802_v25 = vpack.c.bf16 %v800_v24, %v799_v23 }
 0x769   :  { %1030 = vmatmul.mubr.msk.bf16.vlgmr.msra.gmra.mxu1 %vm727_vm1, %v802_v25 }
 0x829   :  { %v1031_v27 = vpop.f32.mrf.mxu1 }
 0x82a   :  { %v899_v28 = vadd.f32 %v1031_v27, %v956_v26 }
 0x82b   :  { %v875_v29 = vpop.f32.mrf.mxu1 }
 0x82c   :  { %904 = vst.msk [vmem:[%s1352_s6 + $0x10] sm:$0xff] %vm901_vm2, %v899_v28  ;;  %v897_v30 = vadd.f32 %v956_v26, %v875_v29 }
 0x82d   :  { %v1032_v31 = vpop.f32.mrf.mxu1 }
 0x82e   :  { %902 = vst.msk [vmem:[%s1352_s6] sm:$0xff] %vm901_vm2, %v897_v30  ;;  %v900_v32 = vadd.f32 %v1032_v31, %v956_v26 }
 0x82f   :  { %v878_v33 = vpop.f32.mrf.mxu1 }
 0x830   :  { %905 = vst.msk [vmem:[%s1352_s6 + $0x18] sm:$0xff] %vm901_vm2, %v900_v32  ;;  %v898_v34 = vadd.f32 %v956_v26, %v878_v33 }
 0x832   :  { %903 = vst.msk [vmem:[%s1352_s6 + $0x8] sm:$0xff] %vm901_vm2, %v898_v34 }
 0x833   :  { %910 = vsyncpa [#allocation3], 1 }
 0x834   :  { %911 = vsyncpa [#allocation5], 1 }

</bundles_post_ra>
